<compile_context>
chip_gen: v5e
topology: v5e:2x2
jax: 0.10.0
libtpu: 0.0.40
codegen_flags: <defaults>
</compile_context>

<pallas_src>
import functools

import jax
import jax.numpy as jnp
import numpy as np
from jax import lax
from jax.experimental import pallas as pl
from jax.experimental.pallas import tpu as pltpu

EPS = 1e-5          # nn.BatchNorm2d default eps
NEG_SLOPE = 0.1     # nn.LeakyReLU(0.1)
LANE = 128


def _round_up(x, m):
    return (x + m - 1) // m * m


def _vmem_capacity_bytes():
    try:
        return int(pltpu.get_tpu_info().vmem_capacity_bytes)
    except Exception:
        return 64 * 1024 * 1024   # conservative fallback (v7x per-TensorCore physical VMEM)


# ---------------- pass 1: bias-free conv tile + per-channel sum / sumsq accumulation ----------
def _stats_kernel(p_ref, w_ref, stats_ref):
    # p_ref: (t_hw, K) bf16 | w_ref: (K, tn) bf16 | stats_ref: (1, 2, tn) f32 (VMEM-resident acc)
    @pl.when(pl.program_id(2) == 0)
    def _init():
        stats_ref[...] = jnp.zeros_like(stats_ref)

    g = jnp.dot(p_ref[...], w_ref[...], preferred_element_type=jnp.float32)   # (t_hw, tn)
    # Zero-padded spatial rows give g == 0 -> contribute exactly 0; no row mask needed.
    part = jnp.concatenate(
        [jnp.sum(g, axis=0, keepdims=True), jnp.sum(g * g, axis=0, keepdims=True)], axis=0)
    stats_ref[0] += part


# ---------------- pass 2: conv tile + folded BN shift + LeakyReLU, NCHW-major store ------------
def _apply_kernel(p_ref, w_ref, shift_ref, o_ref):
    # p_ref: (1, t_hw, K) bf16 | w_ref: (K, tn) bf16 (BN scale pre-folded) | shift_ref: (1, tn) f32
    # o_ref: (1, tn, t_hw) f32 -- channels-major so the wrapper's NCHW reshape is free.
    g = jnp.dot(p_ref[0], w_ref[...], preferred_element_type=jnp.float32)     # (t_hw, tn)
    z = g + shift_ref[...]
    z = jnp.where(z >= 0, z, NEG_SLOPE * z)
    o_ref[0] = z.T     # XLU transpose (otherwise-idle unit); avoids a full-HBM NCHW transpose


@functools.partial(jax.jit, static_argnames=("max_tn",))
def conv_bn_relu(x_nchw, weight_oihw, bias, gamma, beta, *, max_tn=None):
    """x_nchw: (N, Cin, H, W); weight_oihw: (Cout, Cin, 3, 3). Returns NCHW f32."""
    N, Cin, H, W = x_nchw.shape
    Cout = weight_oihw.shape[0]
    Ho = (H + 2 * 1 - 3) // 2 + 1
    Wo = (W + 2 * 1 - 3) // 2 + 1
    HW = Ho * Wo
    M = N * HW                       # number of real output pixels (BN sample count)
    K = 9 * Cin                      # im2col contraction dim -- left UNPADDED in HBM
    Cp = _round_up(Cout, LANE)       # lane-dense weight columns / output channel rows

    # --- generation-aware VMEM budget (v5e/v6e: ~64 MiB scoped, v7x: ~32 MiB) ---
    vmem_limit = min(_vmem_capacity_bytes() // 2, 64 * 1024 * 1024)
    budget = (vmem_limit * 3) // 4

    # --- Cout tile: tn | Cp, only smaller than Cp when double-buffered weights would not fit ---
    tn = 128
    for cand in sorted({Cp, 1024, 512, 256, 128}, reverse=True):
        if cand > Cp or Cp % cand != 0:
            continue
        if max_tn is not None and cand > max_tn:
            continue
        if 2 * (K * cand * 2) <= budget // 3:
            tn = cand
            break
    n_j = Cp // tn

    # --- spatial tile: multiple of 128 (lane-dense NCHW-major stores), minimize padding, fit
    #     the double-buffered patch + output + weight working set in the scoped budget ---
    def _step_bytes(c):
        return 2 * (c * K * 2) + 2 * (tn * c * 4) + 2 * (K * tn * 2) + 4096
    cands = [c for c in (1024, 768, 640, 512, 384, 256, 128) if _step_bytes(c) <= budget]
    if not cands:
        cands = [128]
    t_hw, hw_pad = None, None
    for c in cands:
        pad = _round_up(HW, c)
        if hw_pad is None or pad < hw_pad or (pad == hw_pad and c > t_hw):
            t_hw, hw_pad = c, pad
    n_hw = hw_pad // t_hw

    # --- glue (fused in this jit): NCHW -> NHWC bf16, pad, im2col for 3x3 / stride 2 ---
    x = jnp.transpose(x_nchw, (0, 2, 3, 1)).astype(jnp.bfloat16)
    xp = jnp.pad(x, ((0, 0), (1, 1), (1, 1), (0, 0)))
    taps = [xp[:, ky::2, kx::2, :][:, :Ho, :Wo, :] for ky in range(3) for kx in range(3)]
    patches = jnp.concatenate(taps, axis=-1).reshape(N, HW, K)        # K ordered (ky, kx, cin)
    patches = jnp.pad(patches, ((0, 0), (0, hw_pad - HW), (0, 0)))    # zero rows -> 0 stats

    w_f32 = jnp.transpose(weight_oihw, (2, 3, 1, 0)).reshape(K, Cout).astype(jnp.float32)
    w_f32 = jnp.pad(w_f32, ((0, 0), (0, Cp - Cout)))                  # (K, Cp) f32
    w_bf16 = w_f32.astype(jnp.bfloat16)
    b_p = jnp.pad(bias.astype(jnp.float32), (0, Cp - Cout))
    g_p = jnp.pad(gamma.astype(jnp.float32), (0, Cp - Cout))          # pad gamma with 0 -> no NaN
    bt_p = jnp.pad(beta.astype(jnp.float32), (0, Cp - Cout))

    tot_rows = N * hw_pad
    tot_tiles = tot_rows // t_hw
    nsplit = 2 if tot_tiles % 2 == 0 else 1      # v7x: shard the stats reduction over both cores
    tps = tot_tiles // nsplit
    patches2d = patches.reshape(tot_rows, K)     # contiguous -> free bitcast view

    gemm_flops = 2 * tot_rows * K * Cp

    # ---- pass 1: per-channel sum / sumsq of the bias-free GEMM (per-split partials) ----
    partials = pl.pallas_call(
        _stats_kernel,
        out_shape=jax.ShapeDtypeStruct((nsplit, 2, Cp), jnp.float32),
        grid=(nsplit, n_j, tps),
        in_specs=[
            pl.BlockSpec((t_hw, K), lambda s, j, t: (s * tps + t, 0)),   # streamed patch tile
            pl.BlockSpec((K, tn), lambda s, j, t: (0, j)),               # VMEM-resident weights
        ],
        out_specs=pl.BlockSpec((1, 2, tn), lambda s, j, t: (s, 0, j)),
        compiler_params=pltpu.CompilerParams(
            dimension_semantics=("parallel", "arbitrary", "arbitrary"),
            vmem_limit_bytes=vmem_limit),
        cost_estimate=pl.CostEstimate(
            flops=gemm_flops, transcendentals=0,
            bytes_accessed=n_j * tot_rows * K * 2 + K * Cp * 2 + nsplit * 2 * Cp * 4),
    )(patches2d, w_bf16)

    # ---- finalize BN stats once (tiny XLA ops): un-shift by the bias, fold into scale/shift ----
    sum_g = jnp.sum(partials[:, 0, :], axis=0)
    sumsq_g = jnp.sum(partials[:, 1, :], axis=0)
    m_f = jnp.float32(M)
    sum_y = sum_g + m_f * b_p
    sumsq_y = sumsq_g + 2.0 * b_p * sum_g + m_f * b_p * b_p
    mean = sum_y / m_f
    var = jnp.maximum(sumsq_y / m_f - mean * mean, 0.0)   # biased variance (PyTorch training fwd)
    scale = g_p * lax.rsqrt(var + EPS)
    # Fold BN scale into the weights (scaled from f32 to avoid double bf16 rounding) and the conv
    # bias into the shift: out = leaky(P @ (W*scale) + (b*scale + beta - mean*scale)).
    w2_bf16 = (w_f32 * scale[None, :]).astype(jnp.bfloat16)
    shift2 = (b_p * scale + bt_p - mean * scale).reshape(1, Cp)

    # ---- pass 2: recompute conv tile, apply shift + LeakyReLU, store NCHW-major ----
    out3 = pl.pallas_call(
        _apply_kernel,
        out_shape=jax.ShapeDtypeStruct((N, Cp, hw_pad), jnp.float32),
        grid=(N, n_j, n_hw),
        in_specs=[
            pl.BlockSpec((1, t_hw, K), lambda n, j, t: (n, t, 0)),
            pl.BlockSpec((K, tn), lambda n, j, t: (0, j)),
            pl.BlockSpec((1, tn), lambda n, j, t: (0, j)),
        ],
        out_specs=pl.BlockSpec((1, tn, t_hw), lambda n, j, t: (n, j, t)),
        compiler_params=pltpu.CompilerParams(
            dimension_semantics=("parallel", "parallel", "parallel"),
            vmem_limit_bytes=vmem_limit),
        cost_estimate=pl.CostEstimate(
            flops=gemm_flops, transcendentals=0,
            bytes_accessed=n_j * tot_rows * K * 2 + K * Cp * 2 + Cp * 4
                           + N * Cp * hw_pad * 4),
    )(patches, w2_bf16, shift2)

    # NCHW comes straight from the kernel store layout: slice (no-op when Cp==Cout and
    # hw_pad==HW) + free reshape, instead of an HBM NHWC->NCHW transpose round trip.
    return out3[:, :Cout, :HW].reshape(N, Cout, Ho, Wo)


def _reference(x_nchw, weight_oihw, bias, gamma, beta):
    y = lax.conv_general_dilated(
        x_nchw, weight_oihw, window_strides=(2, 2), padding=((1, 1), (1, 1)),
        dimension_numbers=("NCHW", "OIHW", "NCHW"),
        precision=lax.Precision.HIGHEST)
    y = y + bias.reshape(1, -1, 1, 1)
    mean = jnp.mean(y, axis=(0, 2, 3), keepdims=True)
    var = jnp.mean((y - mean) ** 2, axis=(0, 2, 3), keepdims=True)
    z = (y - mean) * lax.rsqrt(var + EPS) * gamma.reshape(1, -1, 1, 1) + beta.reshape(1, -1, 1, 1)
    return jnp.where(z >= 0, z, NEG_SLOPE * z)


if __name__ == "__main__":
    cases = [
        # (N, Cin, H, W, Cout, max_tn)
        (2, 4, 16, 16, 8, None),     # canonical small shape, single-tile paths
        (3, 3, 19, 17, 13, None),    # odd everything: nsplit=1 fallback, padded Cout/HW slices
        (2, 4, 65, 65, 8, None),     # multi-tile spatial grid + multi-step stats accumulation
        (2, 4, 16, 16, 200, 128),    # Cp=256 with forced tn=128 -> exercises the Cout grid axis
    ]
    key = jax.random.PRNGKey(0)
    for idx, (n, cin, h, w, cout, max_tn) in enumerate(cases):
        key, kx, kw, kb, kg, kbt = jax.random.split(key, 6)
        x = jax.random.normal(kx, (n, cin, h, w), dtype=jnp.float32)
        weight = jax.random.normal(kw, (cout, cin, 3, 3), dtype=jnp.float32) * 0.1
        bias = jax.random.normal(kb, (cout,), dtype=jnp.float32) * 0.1
        if idx == 0:
            gamma = jnp.ones((cout,), dtype=jnp.float32)   # BatchNorm2d default affine params
            beta = jnp.zeros((cout,), dtype=jnp.float32)
        else:
            gamma = 1.0 + 0.1 * jax.random.normal(kg, (cout,), dtype=jnp.float32)
            beta = 0.1 * jax.random.normal(kbt, (cout,), dtype=jnp.float32)

        out = jax.block_until_ready(conv_bn_relu(x, weight, bias, gamma, beta, max_tn=max_tn))
        ref = jax.block_until_ready(_reference(x, weight, bias, gamma, beta))
        # Kernel matmuls are bf16-in / f32-accumulate on the MXU; tolerance covers bf16 rounding
        # after the BN unit-variance rescale (reference is full f32 HIGHEST precision).
        np.testing.assert_allclose(np.asarray(out), np.asarray(ref), rtol=2e-2, atol=2e-2)

    print("KERNEL_OK")
</pallas_src>

<mosaic_0001>
module attributes {stable_mosaic.version = 11 : i64} {
  func.func @_stats_kernel(%arg0: i32, %arg1: i32, %arg2: i32, %arg3: memref<128x36xbf16, #tpu.memory_space<vmem>>, %arg4: memref<36x128xbf16, #tpu.memory_space<vmem>>, %arg5: memref<1x2x128xf32, #tpu.memory_space<vmem>>) attributes {dimension_semantics = [#tpu.dimension_semantics<parallel>, #tpu.dimension_semantics<arbitrary>, #tpu.dimension_semantics<arbitrary>], iteration_bounds = array<i64: 2, 1, 1>, scalar_prefetch = 0 : i64, scratch_operands = 0 : i64, tpu.core_type = #tpu.core_type<tc>, window_params = [{transform_indices = @transform_0, window_bounds = array<i64: 128, 36>}, {transform_indices = @transform_1, window_bounds = array<i64: 36, 128>}, {transform_indices = @transform_2, window_bounds = array<i64: 1, 2, 128>}]} {
    %c0_i32 = arith.constant 0 : i32
    %0 = arith.cmpi eq, %arg2, %c0_i32 : i32
    %1 = arith.extui %0 : i1 to i32
    %c0_i32_0 = arith.constant 0 : i32
    %2 = arith.cmpi ne, %1, %c0_i32_0 : i32
    scf.if %2 {
      %cst_12 = arith.constant 0.000000e+00 : f32
      %18 = vector.broadcast %cst_12 : f32 to vector<1x2x128xf32>
      %c0_13 = arith.constant 0 : index
      %c0_14 = arith.constant 0 : index
      %c0_15 = arith.constant 0 : index
      %19 = vector.load %arg5[%c0_13, %c0_14, %c0_15] : memref<1x2x128xf32, #tpu.memory_space<vmem>>, vector<1x2x128xf32>
      tpu.vector_store %arg5[%c0_13, %c0_14, %c0_15], %18 {strides = array<i32>} : memref<1x2x128xf32, #tpu.memory_space<vmem>>, vector<1x2x128xf32>,
    } else {
    }
    %c0 = arith.constant 0 : index
    %c0_1 = arith.constant 0 : index
    %3 = vector.load %arg3[%c0, %c0_1] : memref<128x36xbf16, #tpu.memory_space<vmem>>, vector<128x36xbf16>
    %c0_2 = arith.constant 0 : index
    %c0_3 = arith.constant 0 : index
    %4 = vector.load %arg4[%c0_2, %c0_3] : memref<36x128xbf16, #tpu.memory_space<vmem>>, vector<36x128xbf16>
    %cst = arith.constant dense<0.000000e+00> : vector<128x128xf32>
    %5 = tpu.matmul %3, %4, %cst {dimension_numbers = #tpu.dot_dimension_numbers<[1], [0], [0], [1], [0, 0, 1, 1], [], []>} : vector<128x36xbf16>, vector<36x128xbf16>, vector<128x128xf32> -> vector<128x128xf32>
    %cst_4 = arith.constant dense<0.000000e+00> : vector<128xf32>
    %6 = vector.multi_reduction <add>, %5, %cst_4 [0] : vector<128x128xf32> to vector<128xf32>
    %7 = vector.shape_cast %6 : vector<128xf32> to vector<1x128xf32>
    %8 = arith.mulf %5, %5 : vector<128x128xf32>
    %cst_5 = arith.constant dense<0.000000e+00> : vector<128xf32>
    %9 = vector.multi_reduction <add>, %8, %cst_5 [0] : vector<128x128xf32> to vector<128xf32>
    %10 = vector.shape_cast %9 : vector<128xf32> to vector<1x128xf32>
    %11 = tpu.concatenate %7, %10 in 0 : vector<1x128xf32>, vector<1x128xf32> -> vector<2x128xf32>
    %c0_6 = arith.constant 0 : index
    %c0_7 = arith.constant 0 : index
    %c0_8 = arith.constant 0 : index
    %12 = vector.load %arg5[%c0_6, %c0_7, %c0_8] : memref<1x2x128xf32, #tpu.memory_space<vmem>>, vector<1x2x128xf32>
    %13 = vector.shape_cast %12 : vector<1x2x128xf32> to vector<2x128xf32>
    %14 = arith.addf %13, %11 : vector<2x128xf32>
    %c0_9 = arith.constant 0 : index
    %c0_10 = arith.constant 0 : index
    %c0_11 = arith.constant 0 : index
    %15 = vector.load %arg5[%c0_9, %c0_10, %c0_11] : memref<1x2x128xf32, #tpu.memory_space<vmem>>, vector<1x2x128xf32>
    %16 = vector.shape_cast %15 : vector<1x2x128xf32> to vector<2x128xf32>
    %17 = vector.shape_cast %14 : vector<2x128xf32> to vector<1x2x128xf32>
    tpu.vector_store %arg5[%c0_9, %c0_10, %c0_11], %17 {strides = array<i32>} : memref<1x2x128xf32, #tpu.memory_space<vmem>>, vector<1x2x128xf32>,
    return
  }
  func.func @transform_0(%arg0: i32, %arg1: i32, %arg2: i32) -> (i32, i32) {
    %c1_i32 = arith.constant 1 : i32
    %0 = arith.muli %arg0, %c1_i32 : i32
    %1 = arith.addi %0, %arg2 : i32
    %c0_i32 = arith.constant 0 : i32
    %c0_i32_0 = arith.constant 0 : i32
    return %1, %c0_i32 : i32, i32
  }
  func.func @transform_1(%arg0: i32, %arg1: i32, %arg2: i32) -> (i32, i32) {
    %c0_i32 = arith.constant 0 : i32
    %c0_i32_0 = arith.constant 0 : i32
    return %c0_i32, %arg1 : i32, i32
  }
  func.func @transform_2(%arg0: i32, %arg1: i32, %arg2: i32) -> (i32, i32, i32) {
    %c0_i32 = arith.constant 0 : i32
    %c0_i32_0 = arith.constant 0 : i32
    return %arg0, %c0_i32, %arg1 : i32, i32, i32
  }
}

module attributes {stable_mosaic.version = 11 : i64} {
  func.func @_apply_kernel(%arg0: i32, %arg1: i32, %arg2: i32, %arg3: memref<1x128x36xbf16, #tpu.memory_space<vmem>>, %arg4: memref<36x128xbf16, #tpu.memory_space<vmem>>, %arg5: memref<1x128xf32, #tpu.memory_space<vmem>>, %arg6: memref<1x128x128xf32, #tpu.memory_space<vmem>>) attributes {dimension_semantics = [#tpu.dimension_semantics<parallel>, #tpu.dimension_semantics<parallel>, #tpu.dimension_semantics<parallel>], iteration_bounds = array<i64: 2, 1, 1>, scalar_prefetch = 0 : i64, scratch_operands = 0 : i64, tpu.core_type = #tpu.core_type<tc>, window_params = [{transform_indices = @transform_0, window_bounds = array<i64: 1, 128, 36>}, {transform_indices = @transform_1, window_bounds = array<i64: 36, 128>}, {transform_indices = @transform_2, window_bounds = array<i64: 1, 128>}, {transform_indices = @transform_3, window_bounds = array<i64: 1, 128, 128>}]} {
    %c0 = arith.constant 0 : index
    %c0_0 = arith.constant 0 : index
    %c0_1 = arith.constant 0 : index
    %0 = vector.load %arg3[%c0, %c0_0, %c0_1] : memref<1x128x36xbf16, #tpu.memory_space<vmem>>, vector<1x128x36xbf16>
    %1 = vector.shape_cast %0 : vector<1x128x36xbf16> to vector<128x36xbf16>
    %c0_2 = arith.constant 0 : index
    %c0_3 = arith.constant 0 : index
    %2 = vector.load %arg4[%c0_2, %c0_3] : memref<36x128xbf16, #tpu.memory_space<vmem>>, vector<36x128xbf16>
    %cst = arith.constant dense<0.000000e+00> : vector<128x128xf32>
    %3 = tpu.matmul %1, %2, %cst {dimension_numbers = #tpu.dot_dimension_numbers<[1], [0], [0], [1], [0, 0, 1, 1], [], []>} : vector<128x36xbf16>, vector<36x128xbf16>, vector<128x128xf32> -> vector<128x128xf32>
    %c0_4 = arith.constant 0 : index
    %c0_5 = arith.constant 0 : index
    %4 = vector.load %arg5[%c0_4, %c0_5] : memref<1x128xf32, #tpu.memory_space<vmem>>, vector<1x128xf32>
    %5 = vector.broadcast %4 : vector<1x128xf32> to vector<128x128xf32>
    %6 = arith.addf %3, %5 : vector<128x128xf32>
    %cst_6 = arith.constant 0.000000e+00 : f32
    %7 = vector.broadcast %cst_6 : f32 to vector<128x128xf32>
    %8 = arith.cmpf oge, %6, %7 : vector<128x128xf32>
    %cst_7 = arith.constant 1.000000e-01 : f32
    %9 = vector.broadcast %cst_7 : f32 to vector<128x128xf32>
    %10 = arith.mulf %9, %6 : vector<128x128xf32>
    %11 = arith.select %8, %6, %10 : vector<128x128xi1>, vector<128x128xf32>
    %12 = tpu.transpose %11, [1, 0] : vector<128x128xf32> -> vector<128x128xf32>
    %c0_8 = arith.constant 0 : index
    %c0_9 = arith.constant 0 : index
    %c0_10 = arith.constant 0 : index
    %13 = vector.load %arg6[%c0_8, %c0_9, %c0_10] : memref<1x128x128xf32, #tpu.memory_space<vmem>>, vector<1x128x128xf32>
    %14 = vector.shape_cast %13 : vector<1x128x128xf32> to vector<128x128xf32>
    %15 = vector.shape_cast %12 : vector<128x128xf32> to vector<1x128x128xf32>
    tpu.vector_store %arg6[%c0_8, %c0_9, %c0_10], %15 {strides = array<i32>} : memref<1x128x128xf32, #tpu.memory_space<vmem>>, vector<1x128x128xf32>,
    return
  }
  func.func @transform_0(%arg0: i32, %arg1: i32, %arg2: i32) -> (i32, i32, i32) {
    %c0_i32 = arith.constant 0 : i32
    %c0_i32_0 = arith.constant 0 : i32
    return %arg0, %arg2, %c0_i32 : i32, i32, i32
  }
  func.func @transform_1(%arg0: i32, %arg1: i32, %arg2: i32) -> (i32, i32) {
    %c0_i32 = arith.constant 0 : i32
    %c0_i32_0 = arith.constant 0 : i32
    return %c0_i32, %arg1 : i32, i32
  }
  func.func @transform_2(%arg0: i32, %arg1: i32, %arg2: i32) -> (i32, i32) {
    %c0_i32 = arith.constant 0 : i32
    %c0_i32_0 = arith.constant 0 : i32
    return %c0_i32, %arg1 : i32, i32
  }
  func.func @transform_3(%arg0: i32, %arg1: i32, %arg2: i32) -> (i32, i32, i32) {
    %c0_i32 = arith.constant 0 : i32
    return %arg0, %arg1, %arg2 : i32, i32, i32
  }
}

</mosaic_0001>

<bundles_post_ra>
// kernel: conv_bn_relu.3
= control target key start
LH: loop header
LB: loop body
LE: loop exit
PB: predicated region body
PF: predicated region fallthrough
CT: control target
= control target key end

     0   :  { %s789_s12 = smov 0   ;;  %s791_s13 = smov 0   ;;  %s882_s0 = inlined_call_operand.vmem [shape: bf16[2,128,36], index: 0, kind: input, shape index: {}]   ;;  %s883_s1 = inlined_call_operand.vmem [shape: bf16[36,128], index: 1, kind: input, shape index: {}]   ;;  %s884_s2 = inlined_call_operand.vmem [shape: f32[1,128], index: 2, kind: input, shape index: {}]   ;;  %s885_s3 = inlined_call_operand.vmem [shape: f32[2,128,128], index: 3, kind: output, shape index: {}]  }
   0x1   :  { %s793_s14 = smov 0  }
   0x2 LB: > { %s32_s15 = sadd.s32 1, %s763_s13  ;;  %p644_p0 = scmp.ge.s32.totalorder %s767_s14, 1  ;;  %s767_s14 = sphi %s793_s14, %s13_s14   ;;  %s763_s13 = sphi %s791_s13, %s887_s13   ;;  %s759_s12 = sphi %s789_s12, %s886_s12  }
   0x3   : > { %p34_p1 = scmp.ge.s32.totalorder %s32_s15, 2  ;;  %p184_p2 = scmp.lt.s32.totalorder %s767_s14, 3 }
   0x5   : > { %s889_s15 = smov (%p34_p1, %s32_s15), 0  ;;  %p185_p3 = pnand %p644_p0, %p184_p2 }
   0x6   : > { %p227_p4 = scmp.lt.s32.totalorder (!%p185_p3), %s759_s12, 1 }
   0x7   : > { %188 = sbr.rel (%p185_p3) target bundleno = 446 (0x1be), region = 32 }
   0xc   : > { %v277_v0 = vld [vmem:[%s883_s1 + $0x10] sm:$0x3]  ;;  %vm362_vm0 = vcmask 1041408   ;;  %s891_s12 = smov (!%p227_p4, %s759_s12), 1  ;;  %v710_v4 = vld [vmem:[%s883_s1 + $0x8] sm:$0xff]  ;;  %v709_v5 = vld [vmem:[%s883_s1] sm:$0xff] }
   0xd   : > { %v331_v1 = vunpack.c.l.b16 %v277_v0  ;;  %s699_s20 = sshll.u32 %s891_s12, 6  ;;  %vm337_vm1 = vcmask 293888   ;;  %v833_v14 = vld [vmem:[%s884_s2] ss:$0 sm:$0xff]  ;;  %s700_s28 = sshll.u32 %s891_s12, 7 }
   0xe   : > { %s234_s25 = scalar_lea.vmem %s882_s0, %s699_s20  ;;  %s855_s4 = scalar_lea.vmem %s885_s3, %s700_s28 }
   0xf   : > { %v334_v2 = vpack.c.b16 %v331_v1, %v331_v1  ;;  %v701_v6 = vld [vmem:[%s234_s25] sm:$0xff]  ;;  %v703_v7 = vld [vmem:[%s234_s25 + $0x10] sm:$0xff]  ;;  %v702_v10 = vld [vmem:[%s234_s25 + $0x8] sm:$0xff] }
  0x10   : > { %v705_v8 = vld [vmem:[%s234_s25 + $0x20] sm:$0xff]  ;;  %v707_v9 = vld [vmem:[%s234_s25 + $0x30] sm:$0xff]  ;;  %v704_v11 = vld [vmem:[%s234_s25 + $0x18] sm:$0xff] }
  0x11   : > { %v364_v3 = vsel %vm362_vm0, %v334_v2, 0  ;;  %v706_v12 = vld [vmem:[%s234_s25 + $0x28] sm:$0xff]  ;;  %v708_v13 = vld [vmem:[%s234_s25 + $0x38] sm:$0xff] }
  0x12   : > { %371 = vmatpush.bf16.msra.mxu0 %v364_v3  ;;  %711 = vmatpush.bf16.msra.mxu1 %v364_v3 }
  0x13   : > { %712 = vmatpush.bf16.msra.mxu2 %v364_v3  ;;  %713 = vmatpush.bf16.msra.mxu3 %v364_v3 }
  0x16   : > { %372 = vmatpush.bf16.msra.mxu0 %v710_v4  ;;  %714 = vmatpush.bf16.msra.mxu1 %v710_v4 }
  0x17   : > { %715 = vmatpush.bf16.msra.mxu2 %v710_v4  ;;  %716 = vmatpush.bf16.msra.mxu3 %v710_v4 }
  0x1a   : > { %373 = vmatpush.bf16.msra.mxu0 %v709_v5  ;;  %717 = vmatpush.bf16.msra.mxu1 %v709_v5 }
  0x1b   : > { %718 = vmatpush.bf16.msra.mxu2 %v709_v5  ;;  %719 = vmatpush.bf16.msra.mxu3 %v709_v5 }
  0x1d   : > { %689 = vmatmul.msk.bf16.vlgmr.msra.gmra.mxu0 %vm337_vm1, %v701_v6  ;;  %691 = vmatmul.msk.bf16.vlgmr.msra.gmra.mxu1 %vm337_vm1, %v703_v7 }
  0x1e   : > { %693 = vmatmul.msk.bf16.vlgmr.msra.gmra.mxu2 %vm337_vm1, %v705_v8  ;;  %695 = vmatmul.msk.bf16.vlgmr.msra.gmra.mxu3 %vm337_vm1, %v707_v9 }
  0x2d   : > { %690 = vmatmul.msk.bf16.gmra.mxu0 %vm337_vm1, %v702_v10  ;;  %692 = vmatmul.msk.bf16.gmra.mxu1 %vm337_vm1, %v704_v11 }
  0x2e   : > { %694 = vmatmul.msk.bf16.gmra.mxu2 %vm337_vm1, %v706_v12  ;;  %696 = vmatmul.msk.bf16.gmra.mxu3 %vm337_vm1, %v708_v13 }
  0x9a   : > { %v375_v15 = vpop.f32.mrf.mxu0  ;;  %v385_v26 = vpop.f32.mrf.mxu1 }
  0x9b   : > { %v376_v16 = vadd.f32 %v833_v14, %v375_v15  ;;  %v386_v31 = vadd.f32 %v833_v14, %v385_v26 }
  0x9d   : > { %vm415_vm2 = vcmp.ge.f32.partialorder %v376_v16, 0.0  ;;  %v431_v17 = vmul.f32 0.1, %v376_v16  ;;  %v435_v34 = vmul.f32 0.1, %v386_v31  ;;  %vm419_vm6 = vcmp.ge.f32.partialorder %v386_v31, 0.0 }
  0x9f   : > { %v447_v18 = vsel %vm415_vm2, %v376_v16, %v431_v17  ;;  %v451_v36 = vsel %vm419_vm6, %v386_v31, %v435_v34 }
  0xa0   : > { %463 = vxpose.xlu0.b32.start [1/16] %v447_v18, 128 }
  0xa1   : > { %v395_v43 = vpop.f32.mrf.mxu2  ;;  %v405_v59 = vpop.f32.mrf.mxu3 }
  0xa2   : > { %v377_v19 = vpop.f32.mrf.mxu0  ;;  %v387_v33 = vpop.f32.mrf.mxu1  ;;  %v396_v47 = vadd.f32 %v833_v14, %v395_v43  ;;  %v406_v63 = vadd.f32 %v833_v14, %v405_v59 }
  0xa3   : > { %v378_v20 = vadd.f32 %v833_v14, %v377_v19  ;;  %v388_v35 = vadd.f32 %v833_v14, %v387_v33 }
  0xa4   : > { %v439_v50 = vmul.f32 0.1, %v396_v47  ;;  %vm423_vm10 = vcmp.ge.f32.partialorder %v396_v47, 0.0  ;;  %v443_v2 = vmul.f32 0.1, %v406_v63  ;;  %vm427_vm14 = vcmp.ge.f32.partialorder %v406_v63, 0.0 }
  0xa5   : > { %vm416_vm3 = vcmp.ge.f32.partialorder %v378_v20, 0.0  ;;  %v432_v21 = vmul.f32 0.1, %v378_v20  ;;  %v436_v38 = vmul.f32 0.1, %v388_v35  ;;  %vm420_vm7 = vcmp.ge.f32.partialorder %v388_v35, 0.0 }
  0xa6   : > { %v455_v52 = vsel %vm423_vm10, %v396_v47, %v439_v50  ;;  %v459_v4 = vsel %vm427_vm14, %v406_v63, %v443_v2 }
  0xa7   : > { %v448_v22 = vsel %vm416_vm3, %v378_v20, %v432_v21  ;;  %v452_v40 = vsel %vm420_vm7, %v388_v35, %v436_v38 }
  0xa8   : > { %464 = vxpose.xlu0.b32.cont [2/16] %v448_v22, 128 }
  0xa9   : > { %v397_v49 = vpop.f32.mrf.mxu2  ;;  %v407_v1 = vpop.f32.mrf.mxu3 }
  0xaa   : > { %v380_v23 = vpop.f32.mrf.mxu0  ;;  %v390_v37 = vpop.f32.mrf.mxu1  ;;  %v398_v51 = vadd.f32 %v833_v14, %v397_v49  ;;  %v408_v3 = vadd.f32 %v833_v14, %v407_v1 }
  0xab   : > { %v381_v24 = vadd.f32 %v833_v14, %v380_v23  ;;  %v391_v39 = vadd.f32 %v833_v14, %v390_v37 }
  0xac   : > { %v440_v54 = vmul.f32 0.1, %v398_v51  ;;  %vm424_vm11 = vcmp.ge.f32.partialorder %v398_v51, 0.0  ;;  %v444_v6 = vmul.f32 0.1, %v408_v3  ;;  %vm428_vm15 = vcmp.ge.f32.partialorder %v408_v3, 0.0 }
  0xad   : > { %vm417_vm4 = vcmp.ge.f32.partialorder %v381_v24, 0.0  ;;  %v433_v25 = vmul.f32 0.1, %v381_v24  ;;  %v437_v41 = vmul.f32 0.1, %v391_v39  ;;  %vm421_vm8 = vcmp.ge.f32.partialorder %v391_v39, 0.0 }
  0xae   : > { %v456_v56 = vsel %vm424_vm11, %v398_v51, %v440_v54  ;;  %v460_v8 = vsel %vm428_vm15, %v408_v3, %v444_v6 }
  0xaf   : > { %v449_v27 = vsel %vm417_vm4, %v381_v24, %v433_v25  ;;  %v453_v45 = vsel %vm421_vm8, %v391_v39, %v437_v41 }
  0xb0   : > { %465 = vxpose.xlu0.b32.cont [3/16] %v449_v27, 128 }
  0xb1   : > { %v400_v53 = vpop.f32.mrf.mxu2  ;;  %v410_v5 = vpop.f32.mrf.mxu3 }
  0xb2   : > { %v382_v28 = vpop.f32.mrf.mxu0  ;;  %v392_v42 = vpop.f32.mrf.mxu1  ;;  %v401_v55 = vadd.f32 %v833_v14, %v400_v53  ;;  %v411_v7 = vadd.f32 %v833_v14, %v410_v5 }
  0xb3   : > { %v383_v29 = vadd.f32 %v833_v14, %v382_v28  ;;  %v393_v44 = vadd.f32 %v833_v14, %v392_v42 }
  0xb4   : > { %v441_v57 = vmul.f32 0.1, %v401_v55  ;;  %vm425_vm12 = vcmp.ge.f32.partialorder %v401_v55, 0.0  ;;  %v445_v9 = vmul.f32 0.1, %v411_v7  ;;  %vm429_vm0 = vcmp.ge.f32.partialorder %v411_v7, 0.0 }
  0xb5   : > { %vm418_vm5 = vcmp.ge.f32.partialorder %v383_v29, 0.0  ;;  %v434_v30 = vmul.f32 0.1, %v383_v29  ;;  %v438_v46 = vmul.f32 0.1, %v393_v44  ;;  %vm422_vm9 = vcmp.ge.f32.partialorder %v393_v44, 0.0 }
  0xb6   : > { %v457_v61 = vsel %vm425_vm12, %v401_v55, %v441_v57  ;;  %v461_v12 = vsel %vm429_vm0, %v411_v7, %v445_v9 }
  0xb7   : > { %v450_v32 = vsel %vm418_vm5, %v383_v29, %v434_v30  ;;  %v454_v48 = vsel %vm422_vm9, %v393_v44, %v438_v46 }
  0xb8   : > { %466 = vxpose.xlu0.b32.cont [4/16] %v450_v32, 128 }
  0xb9   : > { %v402_v58 = vpop.f32.mrf.mxu2  ;;  %v412_v10 = vpop.f32.mrf.mxu3 }
  0xba   : > { %v403_v60 = vadd.f32 %v833_v14, %v402_v58  ;;  %v413_v11 = vadd.f32 %v833_v14, %v412_v10 }
  0xbc   : > { %v442_v62 = vmul.f32 0.1, %v403_v60  ;;  %vm426_vm13 = vcmp.ge.f32.partialorder %v403_v60, 0.0  ;;  %v446_v13 = vmul.f32 0.1, %v413_v11  ;;  %vm430_vm1 = vcmp.ge.f32.partialorder %v413_v11, 0.0 }
  0xbe   : > { %v458_v0 = vsel %vm426_vm13, %v403_v60, %v442_v62  ;;  %v462_v15 = vsel %vm430_vm1, %v413_v11, %v446_v13 }
  0xc0   : > { %467 = vxpose.xlu0.b32.cont [5/16] %v451_v36, 128 }
  0xc8   : > { %468 = vxpose.xlu0.b32.cont [6/16] %v452_v40, 128 }
  0xd0   : > { %469 = vxpose.xlu0.b32.cont [7/16] %v453_v45, 128 }
  0xd8   : > { %470 = vxpose.xlu0.b32.cont [8/16] %v454_v48, 128 }
  0xe0   : > { %471 = vxpose.xlu0.b32.cont [9/16] %v455_v52, 128 }
  0xe8   : > { %472 = vxpose.xlu0.b32.cont [10/16] %v456_v56, 128 }
  0xf0   : > { %473 = vxpose.xlu0.b32.cont [11/16] %v457_v61, 128 }
  0xf8   : > { %474 = vxpose.xlu0.b32.cont [12/16] %v458_v0, 128 }
 0x100   : > { %475 = vxpose.xlu0.b32.cont [13/16] %v459_v4, 128 }
 0x108   : > { %476 = vxpose.xlu0.b32.cont [14/16] %v460_v8, 128 }
 0x110   : > { %477 = vxpose.xlu0.b32.cont [15/16] %v461_v12, 128 }
 0x118   : > { %478 = vxpose.xlu0.b32.end [16/16] %v462_v15, 128 }
 0x144   : > { %v479_v14 = vpop.trf.xlu0 }
 0x145   : > { %495 = vst [vmem:[%s855_s4] sm:$0xff] %v479_v14 }
 0x14c   : > { %v480_v16 = vpop.trf.xlu0 }
 0x14d   : > { %496 = vst [vmem:[%s855_s4 + $0x8] sm:$0xff] %v480_v16 }
 0x154   : > { %v481_v17 = vpop.trf.xlu0 }
 0x155   : > { %497 = vst [vmem:[%s855_s4 + $0x10] sm:$0xff] %v481_v17 }
 0x15c   : > { %v482_v18 = vpop.trf.xlu0 }
 0x15d   : > { %498 = vst [vmem:[%s855_s4 + $0x18] sm:$0xff] %v482_v18 }
 0x164   : > { %v483_v19 = vpop.trf.xlu0 }
 0x165   : > { %499 = vst [vmem:[%s855_s4 + $0x20] sm:$0xff] %v483_v19 }
 0x16c   : > { %v484_v20 = vpop.trf.xlu0 }
 0x16d   : > { %500 = vst [vmem:[%s855_s4 + $0x28] sm:$0xff] %v484_v20 }
 0x174   : > { %v485_v21 = vpop.trf.xlu0 }
 0x175   : > { %501 = vst [vmem:[%s855_s4 + $0x30] sm:$0xff] %v485_v21 }
 0x17c   : > { %v486_v22 = vpop.trf.xlu0 }
 0x17d   : > { %502 = vst [vmem:[%s855_s4 + $0x38] sm:$0xff] %v486_v22 }
 0x184   : > { %v487_v23 = vpop.trf.xlu0 }
 0x185   : > { %503 = vst [vmem:[%s855_s4 + $0x40] sm:$0xff] %v487_v23 }
 0x18c   : > { %v488_v24 = vpop.trf.xlu0 }
 0x18d   : > { %504 = vst [vmem:[%s855_s4 + $0x48] sm:$0xff] %v488_v24 }
 0x194   : > { %v489_v25 = vpop.trf.xlu0 }
 0x195   : > { %505 = vst [vmem:[%s855_s4 + $0x50] sm:$0xff] %v489_v25 }
 0x19c   : > { %v490_v26 = vpop.trf.xlu0 }
 0x19d   : > { %506 = vst [vmem:[%s855_s4 + $0x58] sm:$0xff] %v490_v26 }
 0x1a4   : > { %v491_v27 = vpop.trf.xlu0 }
 0x1a5   : > { %507 = vst [vmem:[%s855_s4 + $0x60] sm:$0xff] %v491_v27 }
 0x1ac   : > { %v492_v28 = vpop.trf.xlu0 }
 0x1ad   : > { %508 = vst [vmem:[%s855_s4 + $0x68] sm:$0xff] %v492_v28 }
 0x1b4   : > { %v493_v29 = vpop.trf.xlu0 }
 0x1b5   : > { %509 = vst [vmem:[%s855_s4 + $0x70] sm:$0xff] %v493_v29 }
 0x1bc   : > { %v494_v30 = vpop.trf.xlu0 }
 0x1bd   : > { %510 = vst [vmem:[%s855_s4 + $0x78] sm:$0xff] %v494_v30 }
 0x1be PF: > { %s13_s14 = sadd.s32 1, %s767_s14   ;;  %s886_s12 = smov %s763_s13 }
 0x1bf   : > { %p10_p5 = scmp.ge.s32.totalorder %s13_s14, 4   ;;  %s887_s13 = smov %s889_s15 }
 0x1c1   :  { %12 = sbr.rel (!%p10_p5) target bundleno = 2 (0x2), region = 68 }

// kernel: conv_bn_relu.2
= control target key start
LH: loop header
LB: loop body
LE: loop exit
PB: predicated region body
PF: predicated region fallthrough
CT: control target
= control target key end

     0   :  { %s651_s9 = smov 0   ;;  %s653_s10 = smov 0   ;;  %s711_s0 = inlined_call_operand.vmem [shape: bf16[256,36], index: 0, kind: input, shape index: {}]   ;;  %s712_s1 = inlined_call_operand.vmem [shape: bf16[36,128], index: 1, kind: input, shape index: {}]   ;;  %s713_s2 = inlined_call_operand.vmem [shape: f32[2,2,128], index: 2, kind: output, shape index: {}]  }
   0x1   :  { %s655_s11 = smov 0  }
   0x2 LB: > { %s31_s12 = sadd.s32 1, %s629_s10  ;;  %p513_p0 = scmp.ge.s32.totalorder %s633_s11, 1  ;;  %s633_s11 = sphi %s655_s11, %s12_s11   ;;  %s629_s10 = sphi %s653_s10, %s715_s10   ;;  %s625_s9 = sphi %s651_s9, %s714_s9  }
   0x3   : > { %p33_p1 = scmp.ge.s32.totalorder %s31_s12, 2  ;;  %p147_p2 = scmp.lt.s32.totalorder %s633_s11, 3 }
   0x5   : > { %s717_s12 = smov (%p33_p1, %s31_s12), 0  ;;  %p148_p3 = pnand %p513_p0, %p147_p2 }
   0x6   : > { %s514_s15 = sshll.u32 (!%p148_p3), %s625_s9, 4  ;;  %p188_p5 = scmp.lt.s32.totalorder (!%p148_p3), %s625_s9, 1 }
   0x7   : > { %151 = sbr.rel (%p148_p3) target bundleno = 223 (0xdf), region = 28  ;;  %p178_p4 = scmp.lt.s32.totalorder (!%p148_p3), %s514_s15, 31 }
   0xc   : > { %v221_v0 = vld [vmem:[%s712_s1 + $0x10] sm:$0x3]  ;;  %vm302_vm0 = vcmask 1041408   ;;  %s719_s15 = smov (!%p178_p4, %s514_s15), 31  ;;  %v576_v4 = vld [vmem:[%s712_s1 + $0x8] sm:$0xff]  ;;  %v575_v5 = vld [vmem:[%s712_s1] sm:$0xff] }
   0xd   : > { %v271_v1 = vunpack.c.l.b16 %v221_v0  ;;  %s515_s18 = sshll.u32 %s719_s15, 2  ;;  %vm277_vm1 = vcmask 293888   ;;  %s721_s9 = smov (!%p188_p5, %s625_s9), 1  ;;  %v635_v22 = vmov 0.0   ;;  %vm413_vm2 = vcmask 1040384  }
   0xe   : > { %s181_s23 = scalar_lea.vmem %s711_s0, %s515_s18  ;;  %s516_s24 = sshll.u32 %s721_s9, 1 }
   0xf   : > { %v274_v2 = vpack.c.b16 %v271_v1, %v271_v1  ;;  %v567_v6 = vld [vmem:[%s181_s23] sm:$0xff]  ;;  %v569_v7 = vld [vmem:[%s181_s23 + $0x10] sm:$0xff]  ;;  %v568_v10 = vld [vmem:[%s181_s23 + $0x8] sm:$0xff]  ;;  %s697_s27 = scalar_lea.vmem %s713_s2, %s516_s24 }
  0x10   : > { %v571_v8 = vld [vmem:[%s181_s23 + $0x20] sm:$0xff]  ;;  %v573_v9 = vld [vmem:[%s181_s23 + $0x30] sm:$0xff]  ;;  %v570_v11 = vld [vmem:[%s181_s23 + $0x18] sm:$0xff]  ;;  %200 = vst [vmem:[%s697_s27] sm:$0x3] %v635_v22 }
  0x11   : > { %v304_v3 = vsel %vm302_vm0, %v274_v2, 0  ;;  %v572_v12 = vld [vmem:[%s181_s23 + $0x28] sm:$0xff]  ;;  %v574_v13 = vld [vmem:[%s181_s23 + $0x38] sm:$0xff] }
  0x12   : > { %311 = vmatpush.bf16.msra.mxu0 %v304_v3  ;;  %577 = vmatpush.bf16.msra.mxu1 %v304_v3 }
  0x13   : > { %578 = vmatpush.bf16.msra.mxu2 %v304_v3  ;;  %579 = vmatpush.bf16.msra.mxu3 %v304_v3 }
  0x16   : > { %312 = vmatpush.bf16.msra.mxu0 %v576_v4  ;;  %580 = vmatpush.bf16.msra.mxu1 %v576_v4 }
  0x17   : > { %581 = vmatpush.bf16.msra.mxu2 %v576_v4  ;;  %582 = vmatpush.bf16.msra.mxu3 %v576_v4 }
  0x1a   : > { %313 = vmatpush.bf16.msra.mxu0 %v575_v5  ;;  %583 = vmatpush.bf16.msra.mxu1 %v575_v5 }
  0x1b   : > { %584 = vmatpush.bf16.msra.mxu2 %v575_v5  ;;  %585 = vmatpush.bf16.msra.mxu3 %v575_v5 }
  0x1d   : > { %557 = vmatmul.msk.bf16.vlgmr.msra.gmra.mxu0 %vm277_vm1, %v567_v6  ;;  %559 = vmatmul.msk.bf16.vlgmr.msra.gmra.mxu1 %vm277_vm1, %v569_v7 }
  0x1e   : > { %561 = vmatmul.msk.bf16.vlgmr.msra.gmra.mxu2 %vm277_vm1, %v571_v8  ;;  %563 = vmatmul.msk.bf16.vlgmr.msra.gmra.mxu3 %vm277_vm1, %v573_v9 }
  0x2d   : > { %558 = vmatmul.msk.bf16.gmra.mxu0 %vm277_vm1, %v568_v10  ;;  %560 = vmatmul.msk.bf16.gmra.mxu1 %vm277_vm1, %v570_v11 }
  0x2e   : > { %562 = vmatmul.msk.bf16.gmra.mxu2 %vm277_vm1, %v572_v12  ;;  %564 = vmatmul.msk.bf16.gmra.mxu3 %vm277_vm1, %v574_v13 }
  0x9a   : > { %v315_v14 = vpop.f32.mrf.mxu0  ;;  %v325_v15 = vpop.f32.mrf.mxu1 }
  0x9b   : > { %v376_v25 = vmul.f32 %v315_v14, %v315_v14  ;;  %v380_v35 = vmul.f32 %v325_v15, %v325_v15 }
  0xa1   : > { %v335_v17 = vpop.f32.mrf.mxu2  ;;  %v345_v20 = vpop.f32.mrf.mxu3 }
  0xa2   : > { %v317_v16 = vpop.f32.mrf.mxu0  ;;  %v327_v18 = vpop.f32.mrf.mxu1  ;;  %v384_v49 = vmul.f32 %v335_v17, %v335_v17  ;;  %v388_v63 = vmul.f32 %v345_v20, %v345_v20 }
  0xa3   : > { %v377_v23 = vmul.f32 %v317_v16, %v317_v16  ;;  %v355_v26 = vadd.f32 %v317_v16, %v315_v14  ;;  %v381_v39 = vmul.f32 %v327_v18, %v327_v18 }
  0xa5   : > { %v392_v28 = vadd.f32 %v377_v23, %v376_v25  ;;  %v415_v25 = vld [vmem:[%s697_s27] sm:$0x3] }
  0xa9   : > { %v337_v21 = vpop.f32.mrf.mxu2  ;;  %v347_v34 = vpop.f32.mrf.mxu3 }
  0xaa   : > { %v320_v19 = vpop.f32.mrf.mxu0  ;;  %v330_v24 = vpop.f32.mrf.mxu1  ;;  %v385_v53 = vmul.f32 %v337_v21, %v337_v21  ;;  %v389_v2 = vmul.f32 %v347_v34, %v347_v34 }
  0xab   : > { %v378_v27 = vmul.f32 %v320_v19, %v320_v19  ;;  %v356_v29 = vadd.f32 %v355_v26, %v320_v19  ;;  %v382_v43 = vmul.f32 %v330_v24, %v330_v24 }
  0xad   : > { %v393_v31 = vadd.f32 %v392_v28, %v378_v27 }
  0xb1   : > { %v340_v38 = vpop.f32.mrf.mxu2  ;;  %v350_v52 = vpop.f32.mrf.mxu3 }
  0xb2   : > { %v322_v30 = vpop.f32.mrf.mxu0  ;;  %v332_v42 = vpop.f32.mrf.mxu1  ;;  %v386_v58 = vmul.f32 %v340_v38, %v340_v38  ;;  %v390_v7 = vmul.f32 %v350_v52, %v350_v52 }
  0xb3   : > { %v357_v32 = vadd.f32 %v356_v29, %v322_v30  ;;  %v379_v33 = vmul.f32 %v322_v30, %v322_v30  ;;  %v383_v47 = vmul.f32 %v332_v42, %v332_v42 }
  0xb5   : > { %v358_v36 = vadd.f32 %v357_v32, %v325_v15  ;;  %v394_v37 = vadd.f32 %v393_v31, %v379_v33 }
  0xb7   : > { %v395_v40 = vadd.f32 %v394_v37, %v380_v35  ;;  %v359_v41 = vadd.f32 %v358_v36, %v327_v18 }
  0xb9   : > { %v360_v44 = vadd.f32 %v359_v41, %v330_v24  ;;  %v396_v45 = vadd.f32 %v395_v40, %v381_v39  ;;  %v342_v56 = vpop.f32.mrf.mxu2  ;;  %v352_v5 = vpop.f32.mrf.mxu3 }
  0xba   : > { %v387_v62 = vmul.f32 %v342_v56, %v342_v56  ;;  %v391_v11 = vmul.f32 %v352_v5, %v352_v5 }
  0xbb   : > { %v361_v46 = vadd.f32 %v360_v44, %v332_v42  ;;  %v397_v48 = vadd.f32 %v396_v45, %v382_v43 }
  0xbd   : > { %v362_v50 = vadd.f32 %v361_v46, %v335_v17  ;;  %v398_v51 = vadd.f32 %v397_v48, %v383_v47 }
  0xbf   : > { %v399_v54 = vadd.f32 %v398_v51, %v384_v49  ;;  %v363_v55 = vadd.f32 %v362_v50, %v337_v21 }
  0xc1   : > { %v364_v57 = vadd.f32 %v363_v55, %v340_v38  ;;  %v400_v59 = vadd.f32 %v399_v54, %v385_v53 }
  0xc3   : > { %v401_v60 = vadd.f32 %v400_v59, %v386_v58  ;;  %v365_v61 = vadd.f32 %v364_v57, %v342_v56 }
  0xc5   : > { %v366_v0 = vadd.f32 %v365_v61, %v345_v20  ;;  %v402_v1 = vadd.f32 %v401_v60, %v387_v62 }
  0xc7   : > { %v403_v3 = vadd.f32 %v402_v1, %v388_v63  ;;  %v367_v4 = vadd.f32 %v366_v0, %v347_v34 }
  0xc9   : > { %v368_v6 = vadd.f32 %v367_v4, %v350_v52  ;;  %v404_v8 = vadd.f32 %v403_v3, %v389_v2 }
  0xcb   : > { %v405_v9 = vadd.f32 %v404_v8, %v390_v7  ;;  %v369_v10 = vadd.f32 %v368_v6, %v352_v5 }
  0xcd   : > { %v370_v12 = vrot.slane %v369_v10, 4  ;;  %v406_v13 = vadd.f32 %v405_v9, %v391_v11 }
  0xcf   : > { %v371_v14 = vadd.f32 %v370_v12, %v369_v10  ;;  %v407_v15 = vrot.slane %v406_v13, 4 }
  0xd1   : > { %v372_v16 = vrot.slane %v371_v14, 2  ;;  %v408_v17 = vadd.f32 %v407_v15, %v406_v13 }
  0xd3   : > { %v373_v18 = vadd.f32 %v372_v16, %v371_v14  ;;  %v409_v19 = vrot.slane %v408_v17, 2 }
  0xd5   : > { %v374_v20 = vrot.slane %v373_v18, 1  ;;  %v410_v21 = vadd.f32 %v409_v19, %v408_v17 }
  0xd7   : > { %v411_v22 = vrot.slane %v410_v21, 1  ;;  %v375_v23 = vadd.f32 %v374_v20, %v373_v18 }
  0xd9   : > { %v412_v24 = vadd.f32 %v411_v22, %v410_v21 }
  0xdb   : > { %v414_v26 = vsel %vm413_vm2, %v375_v23, %v412_v24 }
  0xdc   : > { %v416_v27 = vadd.f32 %v415_v25, %v414_v26 }
  0xde   : > { %417 = vst [vmem:[%s697_s27] sm:$0x3] %v416_v27 }
  0xdf PF: > { %s12_s11 = sadd.s32 1, %s633_s11   ;;  %s714_s9 = smov %s629_s10 }
  0xe0   : > { %p9_p6 = scmp.ge.s32.totalorder %s12_s11, 4   ;;  %s715_s10 = smov %s717_s12 }
  0xe2   :  { %11 = sbr.rel (!%p9_p6) target bundleno = 2 (0x2), region = 65 }

</bundles_post_ra>
